<compile_context>
chip_gen: v6e
topology: v6e:2x2x1
jax: 0.10.0
libtpu: 0.0.40
codegen_flags: <defaults>
</compile_context>

<pallas_src>
import functools

import jax
import jax.numpy as jnp
from jax.experimental import pallas as pl
from jax.experimental.pallas import tpu as pltpu


def ffn_kernel(x_ref, w1_ref, b1_ref, w2_ref, b2_ref, o_ref, acc_ref, *, grid_h):
    # x_ref:   (tm, D)  token tile                  (compute dtype)
    # w1_ref:  (D, th)  proj1 weight tile (W1^T)    (compute dtype)
    # b1_ref:  (1, th)  proj1 bias tile             (f32)
    # w2_ref:  (th, D)  proj2 weight tile (W2^T)    (compute dtype)
    # b2_ref:  (1, D)   proj2 bias                  (f32)
    # o_ref:   (tm, D)  output tile                 (out dtype)
    # acc_ref: (tm, D)  f32 accumulator scratch, carried across the H axis
    # grid_h:  static number of H steps (closed over; enables fused epilogue)

    # proj1 on the MXU with f32 accumulation; bias + relu + square in f32.
    h = jnp.dot(x_ref[...], w1_ref[...], preferred_element_type=jnp.float32)
    h = h + b1_ref[...]
    h = jnp.maximum(h, 0.0)
    h = h * h

    # proj2 partial product over this H tile (f32).
    part = jnp.dot(h.astype(w2_ref.dtype), w2_ref[...],
                   preferred_element_type=jnp.float32)

    if grid_h == 1:
        # Single H step: skip the accumulator entirely.
        o_ref[...] = (part + b2_ref[...]).astype(o_ref.dtype)
    else:
        j = pl.program_id(1)

        @pl.when(j == 0)
        def _():
            acc_ref[...] = part          # init with first partial (no zeroing)

        @pl.when(jnp.logical_and(j > 0, j < grid_h - 1))
        def _():
            acc_ref[...] += part

        @pl.when(j == grid_h - 1)
        def _():
            # Fuse last partial + accumulator + bias straight into the output.
            o_ref[...] = (acc_ref[...] + part + b2_ref[...]).astype(o_ref.dtype)


def _tpu_info():
    try:
        return pltpu.get_tpu_info()
    except Exception:
        return None


def _vmem_capacity():
    info = _tpu_info()
    if info is not None:
        v = getattr(info, "vmem_capacity_bytes", None)
        if v:
            return int(v)
    return 64 << 20  # v7x has the smallest per-core VMEM


def _num_tensorcores():
    info = _tpu_info()
    if info is not None:
        for name in ("num_cores", "tensorcore_count", "core_count",
                     "num_tensorcores"):
            v = getattr(info, name, None)
            if v:
                return int(v)
    return 1


def _pick_tm(M, tm, itemsize, num_tc):
    """Token-tile rows: sublane-tile multiple (16 bf16 / 8 f32), MXU-row
    friendly (256/128), and small enough that grid_m >= 2 on multi-TC chips."""
    sub = 16 if itemsize < 4 else 8
    tm = min(tm, M)
    if tm >= M:
        tm = M
        # Megacore / dual-TC: split M so the "parallel" axis has >= 2 blocks.
        if num_tc > 1 and M >= 2 * 256:
            half = (pl.cdiv(M, 2) // 256) * 256
            if 0 < half < M:
                tm = half
        return tm
    gran = sub
    for g in (256, 128):
        if tm >= g:
            gran = g
            break
    tm = max(gran, (tm // gran) * gran)
    return min(tm, M)


def _pick_th(H, th):
    """H tile: a multiple of 128 (lane/MXU friendly); H itself is later
    zero-padded up to a multiple of th."""
    th = min(th, max(H, 128))
    th = max(128, (th // 128) * 128)
    return th


def _vmem_need(tm, th, D, isz, wsz, osz, wbuf):
    return int(
        2 * tm * D * isz          # x tiles (double-buffered)
        + wbuf * D * th * wsz     # W1 tiles
        + wbuf * th * D * wsz     # W2 tiles
        + 2 * 8 * th * 4          # b1 tiles (sublane-padded)
        + 2 * 8 * D * 4           # b2
        + 2 * tm * D * osz        # out tiles
        + tm * D * 4              # f32 accumulator scratch
        + tm * th * 4             # f32 intermediate h
        + tm * th * wsz           # cast copy of h fed to the second matmul
    )


def _weight_spec(block_shape, index_map, nbuf):
    if nbuf is not None and nbuf > 2:
        return pl.BlockSpec(block_shape, index_map,
                            pipeline_mode=pl.Buffered(nbuf))
    return pl.BlockSpec(block_shape, index_map)


def ffn_pallas(x, w1_t, b1, w2_t, b2, *, tm=None, th=None,
               compute_dtype=jnp.bfloat16, weight_buffers=2):
    """FFN forward: relu(x @ W1^T + b1)^2 @ W2^T + b2.

    x: [B, S, D]; w1_t: [D, H]; b1: [1, H]; w2_t: [H, D]; b2: [1, D].
    compute_dtype: dtype for the MXU inputs (default bf16, f32 accumulation);
    None keeps the input precision.
    """
    B, S, D = x.shape
    H = w1_t.shape[1]
    M = B * S
    out_dtype = x.dtype

    if compute_dtype is not None and x.dtype != compute_dtype:
        x = x.astype(compute_dtype)
        w1_t = w1_t.astype(compute_dtype)
        w2_t = w2_t.astype(compute_dtype)
    b1 = b1.astype(jnp.float32)
    b2 = b2.astype(jnp.float32)

    isz = jnp.dtype(x.dtype).itemsize
    wsz = jnp.dtype(w1_t.dtype).itemsize
    osz = jnp.dtype(out_dtype).itemsize

    vmem_cap = _vmem_capacity()
    num_tc = _num_tensorcores()

    # Generation-specific defaults: big tiles on 128 MiB VMEM parts (v5e/v6e),
    # moderate tiles on 64 MiB parts (v7x).
    big_vmem = vmem_cap >= (96 << 20)
    if tm is None:
        tm = 512 if big_vmem else 256
    if th is None:
        th = 1024 if big_vmem else 512

    tm = _pick_tm(M, tm, isz, num_tc)
    th = _pick_th(H, th)

    # Shrink tiles if the full VMEM footprint (incl. intermediates) won't fit.
    budget = int(0.70 * vmem_cap)
    while _vmem_need(tm, th, D, isz, wsz, osz, weight_buffers) > budget and th > 128:
        th = max(128, ((th // 2) // 128) * 128)
    sub = 16 if isz < 4 else 8
    while _vmem_need(tm, th, D, isz, wsz, osz, weight_buffers) > budget and tm > sub:
        tm = max(sub, ((tm // 2) // sub) * sub)

    # Zero-pad H up to a multiple of th: padded W1 columns / b1 entries / W2
    # rows are zero, and relu(0)^2 @ 0 contributes exactly 0 to the output.
    H_pad = pl.cdiv(H, th) * th
    if H_pad != H:
        w1_t = jnp.pad(w1_t, ((0, 0), (0, H_pad - H)))
        b1 = jnp.pad(b1, ((0, 0), (0, H_pad - H)))
        w2_t = jnp.pad(w2_t, ((0, H_pad - H), (0, 0)))

    xm = x.reshape(M, D)
    grid_m = pl.cdiv(M, tm)
    grid_h = H_pad // th
    grid = (grid_m, grid_h)

    vmem_need = _vmem_need(tm, th, D, isz, wsz, osz, weight_buffers)
    vmem_limit = int(min(max(vmem_need * 1.25 + (2 << 20), 32 << 20),
                         0.9 * vmem_cap))

    # Weights are re-streamed once per M step; reflect that in the estimate.
    cost = pl.CostEstimate(
        flops=4 * M * D * H,          # 2*M*D*H per matmul, two matmuls
        transcendentals=0,
        bytes_accessed=int(xm.nbytes
                           + grid_m * (w1_t.nbytes + w2_t.nbytes)
                           + b1.nbytes + b2.nbytes + M * D * osz),
    )

    kernel = functools.partial(ffn_kernel, grid_h=grid_h)

    out = pl.pallas_call(
        kernel,
        out_shape=jax.ShapeDtypeStruct((M, D), out_dtype),
        grid_spec=pltpu.PrefetchScalarGridSpec(
            num_scalar_prefetch=0,
            grid=grid,
            in_specs=[
                pl.BlockSpec((tm, D), lambda i, j: (i, 0)),                  # x
                _weight_spec((D, th), lambda i, j: (0, j), weight_buffers),  # W1^T
                pl.BlockSpec((1, th), lambda i, j: (0, j)),                  # b1
                _weight_spec((th, D), lambda i, j: (j, 0), weight_buffers),  # W2^T
                pl.BlockSpec((1, D), lambda i, j: (0, 0)),                   # b2
            ],
            out_specs=pl.BlockSpec((tm, D), lambda i, j: (i, 0)),
            scratch_shapes=[pltpu.VMEM((tm, D), jnp.float32)],
        ),
        compiler_params=pltpu.CompilerParams(
            dimension_semantics=("parallel", "arbitrary"),
            vmem_limit_bytes=vmem_limit,
        ),
        cost_estimate=cost,
    )(xm, w1_t, b1, w2_t, b2)
    return out.reshape(B, S, D)


def init_ffn_params(key, dim):
    """Deterministic init matching nn.Linear defaults + proj2.weight.zero_()."""
    hdim = 4 * dim
    k1, k2, k3, k4 = jax.random.split(key, 4)
    bound1 = 1.0 / jnp.sqrt(dim)
    bound2 = 1.0 / jnp.sqrt(hdim)
    # proj1: Linear(dim, hdim) -> weight [hdim, dim]; stored transposed [dim, hdim]
    w1_t = jax.random.uniform(k1, (dim, hdim), jnp.float32, -bound1, bound1)
    b1 = jax.random.uniform(k2, (1, hdim), jnp.float32, -bound1, bound1)
    # proj2: Linear(hdim, dim) -> weight zeroed in the module __init__; bias random
    w2_t = jnp.zeros((hdim, dim), jnp.float32)
    del k3  # (would be the proj2 weight draw; zeroed per module __init__)
    b2 = jax.random.uniform(k4, (1, dim), jnp.float32, -bound2, bound2)
    return w1_t, b1, w2_t, b2


def ffn_reference(x, w1_t, b1, w2_t, b2):
    h = jnp.einsum("bsd,dh->bsh", x, w1_t) + b1[0]
    h = jnp.square(jnp.maximum(h, 0.0))
    return jnp.einsum("bsh,hd->bsd", h, w2_t) + b2[0]


if __name__ == "__main__":
    # dim=128 keeps lanes dense (D and H=512 are multiples of 128) while
    # staying small: x is [2, 64, 128] -> 128 tokens.
    B, S, D = 2, 64, 128
    key = jax.random.PRNGKey(0)
    kx, kp = jax.random.split(key)
    x = jax.random.normal(kx, (B, S, D), jnp.float32)
    w1_t, b1, w2_t, b2 = init_ffn_params(kp, D)

    # 1) f32 path with small tiles so both grid axes take >1 step
    #    (M: 128/64 = 2 steps, H: 512/256 = 2 steps -> exercises accumulation).
    y = jax.block_until_ready(
        ffn_pallas(x, w1_t, b1, w2_t, b2, tm=64, th=256, compute_dtype=None))
    y_ref = ffn_reference(x, w1_t, b1, w2_t, b2)
    assert y.shape == (B, S, D)
    assert jnp.allclose(y, y_ref, atol=1e-4, rtol=1e-4)

    # 2) same, but with a nonzero proj2 weight so the second matmul path is
    #    actually validated (the module zeroes it only at init).
    kw2 = jax.random.split(kp)[0]
    w2_nz = jax.random.uniform(kw2, w2_t.shape, jnp.float32, -0.05, 0.05)
    y2 = jax.block_until_ready(
        ffn_pallas(x, w1_t, b1, w2_nz, b2, tm=64, th=256, compute_dtype=None))
    y2_ref = ffn_reference(x, w1_t, b1, w2_nz, b2)
    assert jnp.allclose(y2, y2_ref, atol=1e-3, rtol=1e-3)

    # 3) default path: generation-tuned tiles + bf16 MXU inputs with f32
    #    accumulation; loose tolerance vs f32 reference.
    y3 = jax.block_until_ready(ffn_pallas(x, w1_t, b1, w2_nz, b2))
    assert jnp.allclose(y3, y2_ref, atol=5e-2, rtol=5e-2)

    # 4) awkward hidden width: D=160 -> H=640, th=256 -> H padded to 768.
    #    Exercises the zero-padding path, f32 for a strict comparison.
    D2 = 160
    x4 = jax.random.normal(jax.random.PRNGKey(1), (2, 32, D2), jnp.float32)
    w1b, b1b, w2b, b2b = init_ffn_params(jax.random.PRNGKey(2), D2)
    w2b = jax.random.uniform(jax.random.PRNGKey(3), w2b.shape, jnp.float32,
                             -0.05, 0.05)
    y4 = jax.block_until_ready(
        ffn_pallas(x4, w1b, b1b, w2b, b2b, tm=32, th=256, compute_dtype=None))
    y4_ref = ffn_reference(x4, w1b, b1b, w2b, b2b)
    assert jnp.allclose(y4, y4_ref, atol=1e-3, rtol=1e-3)

    print("KERNEL_OK")
</pallas_src>

<mosaic_0001>
module attributes {stable_mosaic.version = 11 : i64} {
  func.func @ffn_kernel(%arg0: i32, %arg1: i32, %arg2: memref<64x128xf32, #tpu.memory_space<vmem>>, %arg3: memref<128x256xf32, #tpu.memory_space<vmem>>, %arg4: memref<1x256xf32, #tpu.memory_space<vmem>>, %arg5: memref<256x128xf32, #tpu.memory_space<vmem>>, %arg6: memref<1x128xf32, #tpu.memory_space<vmem>>, %arg7: memref<64x128xf32, #tpu.memory_space<vmem>>, %arg8: memref<64x128xf32, #tpu.memory_space<vmem>>) attributes {dimension_semantics = [#tpu.dimension_semantics<parallel>, #tpu.dimension_semantics<arbitrary>], iteration_bounds = array<i64: 2, 2>, scalar_prefetch = 0 : i64, scratch_operands = 1 : i64, tpu.core_type = #tpu.core_type<tc>, window_params = [{transform_indices = @transform_0, window_bounds = array<i64: 64, 128>}, {transform_indices = @transform_1, window_bounds = array<i64: 128, 256>}, {transform_indices = @transform_2, window_bounds = array<i64: 1, 256>}, {transform_indices = @transform_3, window_bounds = array<i64: 256, 128>}, {pipeline_mode = #tpu.pipeline_mode<synchronous>, transform_indices = @transform_4, window_bounds = array<i64: 1, 128>}, {transform_indices = @transform_5, window_bounds = array<i64: 64, 128>}]} {
    %c0 = arith.constant 0 : index
    %c0_0 = arith.constant 0 : index
    %0 = vector.load %arg2[%c0, %c0_0] : memref<64x128xf32, #tpu.memory_space<vmem>>, vector<64x128xf32>
    %c0_1 = arith.constant 0 : index
    %c0_2 = arith.constant 0 : index
    %1 = vector.load %arg3[%c0_1, %c0_2] : memref<128x256xf32, #tpu.memory_space<vmem>>, vector<128x256xf32>
    %cst = arith.constant dense<0.000000e+00> : vector<64x256xf32>
    %2 = tpu.matmul %0, %1, %cst {dimension_numbers = #tpu.dot_dimension_numbers<[1], [0], [0], [1], [0, 0, 1, 1], [], []>} : vector<64x128xf32>, vector<128x256xf32>, vector<64x256xf32> -> vector<64x256xf32>
    %c0_3 = arith.constant 0 : index
    %c0_4 = arith.constant 0 : index
    %3 = vector.load %arg4[%c0_3, %c0_4] : memref<1x256xf32, #tpu.memory_space<vmem>>, vector<1x256xf32>
    %4 = vector.broadcast %3 : vector<1x256xf32> to vector<64x256xf32>
    %5 = arith.addf %2, %4 : vector<64x256xf32>
    %cst_5 = arith.constant 0.000000e+00 : f32
    %6 = vector.broadcast %cst_5 : f32 to vector<64x256xf32>
    %7 = arith.maximumf %5, %6 : vector<64x256xf32>
    %8 = arith.mulf %7, %7 : vector<64x256xf32>
    %c0_6 = arith.constant 0 : index
    %c0_7 = arith.constant 0 : index
    %9 = vector.load %arg5[%c0_6, %c0_7] : memref<256x128xf32, #tpu.memory_space<vmem>>, vector<256x128xf32>
    %cst_8 = arith.constant dense<0.000000e+00> : vector<64x128xf32>
    %10 = tpu.matmul %8, %9, %cst_8 {dimension_numbers = #tpu.dot_dimension_numbers<[1], [0], [0], [1], [0, 0, 1, 1], [], []>} : vector<64x256xf32>, vector<256x128xf32>, vector<64x128xf32> -> vector<64x128xf32>
    %c0_i32 = arith.constant 0 : i32
    %11 = arith.cmpi eq, %arg1, %c0_i32 : i32
    %12 = arith.extui %11 : i1 to i32
    %c0_i32_9 = arith.constant 0 : i32
    %13 = arith.cmpi ne, %12, %c0_i32_9 : i32
    scf.if %13 {
      %c0_14 = arith.constant 0 : index
      %c0_15 = arith.constant 0 : index
      %22 = vector.load %arg8[%c0_14, %c0_15] : memref<64x128xf32, #tpu.memory_space<vmem>>, vector<64x128xf32>
      tpu.vector_store %arg8[%c0_14, %c0_15], %10 {strides = array<i32>} : memref<64x128xf32, #tpu.memory_space<vmem>>, vector<64x128xf32>,
    } else {
    }
    %c0_i32_10 = arith.constant 0 : i32
    %14 = arith.cmpi sgt, %arg1, %c0_i32_10 : i32
    %c1_i32 = arith.constant 1 : i32
    %15 = arith.cmpi slt, %arg1, %c1_i32 : i32
    %16 = arith.andi %14, %15 : i1
    %17 = arith.extui %16 : i1 to i32
    %c0_i32_11 = arith.constant 0 : i32
    %18 = arith.cmpi ne, %17, %c0_i32_11 : i32
    scf.if %18 {
      %c0_14 = arith.constant 0 : index
      %c0_15 = arith.constant 0 : index
      %22 = vector.load %arg8[%c0_14, %c0_15] : memref<64x128xf32, #tpu.memory_space<vmem>>, vector<64x128xf32>
      %23 = arith.addf %22, %10 : vector<64x128xf32>
      %c0_16 = arith.constant 0 : index
      %c0_17 = arith.constant 0 : index
      %24 = vector.load %arg8[%c0_16, %c0_17] : memref<64x128xf32, #tpu.memory_space<vmem>>, vector<64x128xf32>
      tpu.vector_store %arg8[%c0_16, %c0_17], %23 {strides = array<i32>} : memref<64x128xf32, #tpu.memory_space<vmem>>, vector<64x128xf32>,
    } else {
    }
    %c1_i32_12 = arith.constant 1 : i32
    %19 = arith.cmpi eq, %arg1, %c1_i32_12 : i32
    %20 = arith.extui %19 : i1 to i32
    %c0_i32_13 = arith.constant 0 : i32
    %21 = arith.cmpi ne, %20, %c0_i32_13 : i32
    scf.if %21 {
      %c0_14 = arith.constant 0 : index
      %c0_15 = arith.constant 0 : index
      %22 = vector.load %arg8[%c0_14, %c0_15] : memref<64x128xf32, #tpu.memory_space<vmem>>, vector<64x128xf32>
      %23 = arith.addf %22, %10 : vector<64x128xf32>
      %c0_16 = arith.constant 0 : index
      %c0_17 = arith.constant 0 : index
      %24 = vector.load %arg6[%c0_16, %c0_17] : memref<1x128xf32, #tpu.memory_space<vmem>>, vector<1x128xf32>
      %25 = vector.broadcast %24 : vector<1x128xf32> to vector<64x128xf32>
      %26 = arith.addf %23, %25 : vector<64x128xf32>
      %c0_18 = arith.constant 0 : index
      %c0_19 = arith.constant 0 : index
      %27 = vector.load %arg7[%c0_18, %c0_19] : memref<64x128xf32, #tpu.memory_space<vmem>>, vector<64x128xf32>
      tpu.vector_store %arg7[%c0_18, %c0_19], %26 {strides = array<i32>} : memref<64x128xf32, #tpu.memory_space<vmem>>, vector<64x128xf32>,
    } else {
    }
    return
  }
  func.func @transform_0(%arg0: i32, %arg1: i32) -> (i32, i32) {
    %c0_i32 = arith.constant 0 : i32
    %c0_i32_0 = arith.constant 0 : i32
    return %arg0, %c0_i32 : i32, i32
  }
  func.func @transform_1(%arg0: i32, %arg1: i32) -> (i32, i32) {
    %c0_i32 = arith.constant 0 : i32
    %c0_i32_0 = arith.constant 0 : i32
    return %c0_i32, %arg1 : i32, i32
  }
  func.func @transform_2(%arg0: i32, %arg1: i32) -> (i32, i32) {
    %c0_i32 = arith.constant 0 : i32
    %c0_i32_0 = arith.constant 0 : i32
    return %c0_i32, %arg1 : i32, i32
  }
  func.func @transform_3(%arg0: i32, %arg1: i32) -> (i32, i32) {
    %c0_i32 = arith.constant 0 : i32
    %c0_i32_0 = arith.constant 0 : i32
    return %arg1, %c0_i32 : i32, i32
  }
  func.func @transform_4(%arg0: i32, %arg1: i32) -> (i32, i32) {
    %c0_i32 = arith.constant 0 : i32
    %c0_i32_0 = arith.constant 0 : i32
    %c0_i32_1 = arith.constant 0 : i32
    return %c0_i32, %c0_i32_0 : i32, i32
  }
  func.func @transform_5(%arg0: i32, %arg1: i32) -> (i32, i32) {
    %c0_i32 = arith.constant 0 : i32
    %c0_i32_0 = arith.constant 0 : i32
    return %arg0, %c0_i32 : i32, i32
  }
}

</mosaic_0001>

<bundles_post_ra>
// kernel: tpu_custom_call.1
= control target key start
LH: loop header
LB: loop body
LE: loop exit
PB: predicated region body
PF: predicated region fallthrough
CT: control target
= control target key end

     0   :  { %s1931_s0 = inlined_call_operand.hbm [shape: f32[128,128], index: 0, kind: input, shape index: {}]   ;;  %s1932_s1 = inlined_call_operand.hbm [shape: f32[128,512], index: 1, kind: input, shape index: {}]   ;;  %s1933_s2 = inlined_call_operand.hbm [shape: f32[1,512], index: 2, kind: input, shape index: {}]   ;;  %s1934_s3 = inlined_call_operand.hbm [shape: f32[512,128], index: 3, kind: input, shape index: {}]   ;;  %s1935_s4 = inlined_call_operand.vmem [shape: f32[1,128], index: 4, kind: input, shape index: {}]   ;;  %s1936_s5 = inlined_call_operand.hbm [shape: f32[128,128], index: 5, kind: output, shape index: {}]  }
   0x1   :  { %1949 = sst [smem:[#allocation26_spill]] %s1931_s0 }
   0x2   :  { %1950 = sst [smem:[#allocation27_spill]] %s1932_s1 }
   0x3   :  { %1951 = sst [smem:[#allocation28_spill]] %s1935_s4 }
   0x4   :  { %1952 = sst [smem:[#allocation29_spill]] %s1936_s5 }
   0x5   :  { %10 = vsyncpa [#allocation4], 0 }
   0x6   :  { %12 = vsyncpa [#allocation4 + $0x1], 0 }
   0x7   :  { %13 = vsyncpa [#allocation7], 0 }
   0x8   :  { %15 = vsyncpa [#allocation7 + $0x1], 0 }
   0x9   :  { %16 = vsyncpa [#allocation10], 0 }
   0xa   :  { %18 = vsyncpa [#allocation10 + $0x1], 0 }
   0xb   :  { %19 = vsyncpa [#allocation5], 0 }
   0xc   :  { %21 = vsyncpa [#allocation5 + $0x1], 0  ;;  %s1459_s18 = smov 0   ;;  %s1461_s19 = smov 0  }
   0xd   :  { %s1463_s20 = smov 0   ;;  %s1465_s21 = smov 0  }
   0xe   :  { %s1467_s22 = smov 0   ;;  %s1469_s23 = smov 0  }
   0xf   :  { %s1471_s24 = smov 0   ;;  %s1473_s25 = smov 0  }
  0x10   :  { %s1475_s26 = smov 0   ;;  %s1477_s27 = smov 0  }
  0x11   :  { %s1479_s28 = smov 0  }
  0x12 LB: > { %1953 = sst [smem:[#allocation16_spill]] %s1382_s20  ;;  %p54_p0 = scmp.eq.s32.totalorder %s1414_s28, 0  ;;  %s1414_s28 = sphi %s1479_s28, %s27_s28   ;;  %s1410_s27 = sphi %s1477_s27, %s1990_s27   ;;  %s1406_s26 = sphi %s1475_s26, %s1997_s26   ;;  %s1402_s25 = sphi %s1473_s25, %s1996_s25   ;;  %s1398_s24 = sphi %s1471_s24, %s1995_s24   ;;  %s1394_s23 = sphi %s1469_s23, %s1987_s23   ;;  %s1390_s22 = sphi %s1467_s22, %s1994_s22   ;;  %s1386_s21 = sphi %s1465_s21, %s1993_s21   ;;  %s1382_s20 = sphi %s1463_s20, %s1985_s20   ;;  %s1378_s19 = sphi %s1461_s19, %s1992_s19   ;;  %s1374_s18 = sphi %s1459_s18, %s1991_s18  }
  0x13   : > { %1954 = sst [smem:[#allocation17_spill]] %s1386_s21  ;;  %s72_s29 = sadd.s32 1, %s1382_s20 }
  0x14   : > { %1955 = sst [smem:[#allocation18_spill]] %s1394_s23  ;;  %p79_p1 = scmp.ne.s32.totalorder %s1382_s20, %s1378_s19 }
  0x15   : > { %1956 = sst [smem:[#allocation19_spill]] %s1402_s25  ;;  %p85_p2 = scmp.ne.s32.totalorder %s1378_s19, %s1374_s18 }
  0x16   : > { %1957 = sst [smem:[#allocation20_spill]] %s1410_s27  ;;  %p1940_p3 = scmp.lt.s32.totalorder %s1414_s28, 4 }
  0x17   : > { %p81_p4 = por %p79_p1, %p54_p0  ;;  %s232_s30 = sand.u32 1, %s1414_s28  }
  0x18   : > { %s1525_s6 = sand.u32 1, %s1382_s20   ;;  %s989_s8 = sshll.u32 %s1406_s26, 8 }
  0x19   : > { %s1937_s7 = sshll.u32 %s1525_s6, 8  ;;  %s1958_s1 = sld [smem:[#allocation27_spill]] }
  0x1a   : > { %s236_s12 = scalar_lea.vmem [#allocation6], %s1937_s7  ;;  %p1536_p5 = pnand %p1940_p3, %p81_p4 }
  0x1b   : > { %s243_s13 = sshll.u32 %s236_s12, 4  ;;  %p974_p6 = scmp.ge.s32.totalorder %s1414_s28, 1  ;;  %s244_s13 = int_to_ptr.vmem [resolvable:$true] %s243_s13 }
  0x1c   : > { %s1541_s15 = scalar_lea.sflag [#allocation7], %s232_s30  ;;  %p1939_p7 = pneg %p1536_p5 }
  0x1d   : > { %s1187_s16 = scalar_lea.vmem %s244_s13, 4096  ;;  %s1416_s17 = smov [#allocation6]  }
  0x1e   : > { %p1188_p8 = scmp.ne.s32.totalorder %s244_s13, %s1187_s16 }
  0x1f   : > { %s242_s11 = scalar_lea.hbm %s1958_s1, %s989_s8  ;;  %s1192_s8 = sshll.u32 %s1416_s17, 4  ;;  %s1193_s8 = int_to_ptr.vmem [resolvable:$false] %s1192_s8 }
  0x20   : > { %p1190_p9 = pnand %p1188_p8, %p1939_p7  ;;  %s1194_s9 = scalar_lea.vmem %s1193_s8, 8192 }
  0x21   : > { %p1195_p11 = scmp.lt.s32.totalorder %s244_s13, %s1193_s8  ;;  %p1196_p12 = scmp.lt.s32.totalorder %s1194_s9, %s1187_s16 }
  0x22   : > { %p1191_p10 = pneg %p1190_p9 }
  0x23   : > { %p1197_p13 = por %p1196_p12, %p1195_p11 }
  0x25   : > { %p1198_p1 = pnand %p1197_p13, %p1191_p10 }
  0x27   : > { %1201 = shalt.err (!%p1198_p1)
}
  0x28   : > { %s1417_s10 = smov 512   ;;  %s1418_s30 = smov 256  }
  0x29   : > { %s1419_s12 = smov 16   ;;  %p291_p4 = scmp.lt.s32.totalorder %s1414_s28, 5 }
  0x2a   : > { %1065 = dma.hbm_to_vmem [thread:$0]  (!%p1536_p5), %s242_s11, 4096, %s244_s13, %s1541_s15, %s1417_s10, %s1418_s30, %s1419_s12  }
  0x2b   : > { %p1554_p8 = pnand %p974_p6, %p291_p4  ;;  %s1559_s17 = sadd.s32 4294967295, %s1414_s28  }
  0x2c   : > { %s959_s8 = sadd.s32 4294967294, %s1414_s28   ;;  %s36_s9 = sadd.s32 1, %s1406_s26 }
  0x2d   : > { %s39_s7 = sadd.s32 1, %s1410_s27  ;;  %p37_p9 = scmp.ge.s32.totalorder %s36_s9, 2 }
  0x2e   : > { %s46_s11 = sadd.s32 1, %s1394_s23  ;;  %p53_p10 = scmp.ne.s32.totalorder %s1394_s23, %s1390_s22 }
  0x2f   : > { %p59_p11 = scmp.ne.s32.totalorder %s1390_s22, %s1386_s21  ;;  %s1999_s9 = smov (%p37_p9, %s36_s9), 0 }
  0x30   : > { %1961 = sst [smem:[#allocation21_spill]] %s1999_s9  ;;  %s2001_s7 = smov (!%p37_p9, %s39_s7), %s1410_s27 }
  0x31   : > { %p1577_p6 = por %p54_p0, %p53_p10  ;;  %p60_p12 = scmp.eq.s32.totalorder %s1559_s17, 0 }
  0x32   : > { %p41_p13 = scmp.ge.s32.totalorder %s2001_s7, 2  ;;  %s69_s10 = ssub.s32 %s1406_s26, %s1999_s9 }
  0x33   : > { %p1587_p1 = por %p60_p12, %p59_p11  ;;  %p70_p4 = scmp.eq.s32.totalorder %s69_s10, 0 }
  0x34   : > { %s2003_s7 = smov (%p41_p13, %s2001_s7), 0  ;;  %p1603_p0 = por %p85_p2, %p60_p12 }
  0x35   : > { %1964 = sst [smem:[#allocation22_spill]] %s2003_s7  ;;  %s43_s1 = ssub.s32 %s1410_s27, %s2003_s7 }
  0x36   : > { %s1596_s12 = scalar_select %p70_p4, %s1382_s20, %s72_s29  }
  0x37   : > { %p44_p9 = scmp.eq.s32.totalorder %s43_s1, 0  ;;  %p182_p7 = scmp.eq.s32.totalorder %s1559_s17, 3 }
  0x38   : > { %1965 = sst [smem:[#allocation23_spill]] %s1596_s12  ;;  %p188_p3 = scmp.eq.s32.totalorder %s959_s8, 3 }
  0x39   : > { %s211_s9 = sand.u32 1, %s1394_s23   ;;  %p1615_p13 = por %p182_p7, %p53_p10 }
  0x3a   : > { %s1610_s10 = scalar_select %p44_p9, %s1394_s23, %s46_s11  }
  0x3b   : > { %s1968_s25 = scalar_select %p1615_p13, 1, 0 }
  0x3c   : > { %1967 = sst [smem:[#allocation24_spill]] %s1610_s10  ;;  %p1622_p4 = por %p188_p3, %p59_p11 }
  0x3d   : > { %s962_s18 = sshll.u32 %s211_s9, 6  ;;  %s988_s7 = sshll.u32 %s1410_s27, 10 }
  0x3e   : > { %s1969_s29 = scalar_select %p1622_p4, 1, 0 }
  0x3f   : > { %s1971_s0 = sld [smem:[#allocation26_spill]]  ;;  %s215_s8 = scalar_lea.vmem [#allocation3], %s962_s18 }
  0x40   : > { %1970 = sst [smem:[#allocation25_spill]] %s1969_s29  ;;  %s222_s4 = sshll.u32 %s215_s8, 4  ;;  %s223_s4 = int_to_ptr.vmem [resolvable:$true] %s222_s4 }
  0x41   : > { %p1972_p2 = scmp.lt.s32.totalorder %s1414_s28, 4  ;;  %s968_s10 = sshll.u32 %s1525_s6, 1 }
  0x42   : > { %s212_s23 = scalar_lea.sflag [#allocation4], %s211_s9  ;;  %s1215_s29 = scalar_lea.vmem %s223_s4, 1024 }
  0x43   : > { %p1634_p7 = pnand %p1972_p2, %p1577_p6  ;;  %p1216_p10 = scmp.ne.s32.totalorder %s223_s4, %s1215_s29 }
  0x44   : > { %s1420_s20 = smov [#allocation3]  }
  0x45   : > { %s221_s1 = scalar_lea.hbm %s1971_s0, %s988_s7  ;;  %p1204_p3 = pneg %p1634_p7 }
  0x46   : > { %s1220_s7 = sshll.u32 %s1420_s20, 4  ;;  %s1221_s7 = int_to_ptr.vmem [resolvable:$false] %s1220_s7 }
  0x47   : > { %p1218_p11 = pnand %p1216_p10, %p1204_p3  ;;  %s1222_s12 = scalar_lea.vmem %s1221_s7, 2048 }
  0x48   : > { %p1223_p9 = scmp.lt.s32.totalorder %s223_s4, %s1221_s7  ;;  %p1224_p4 = scmp.lt.s32.totalorder %s1222_s12, %s1215_s29 }
  0x49   : > { %p1219_p12 = pneg %p1218_p11 }
  0x4a   : > { %p1225_p13 = por %p1224_p4, %p1223_p9 }
  0x4c   : > { %p1226_p6 = pnand %p1225_p13, %p1219_p12 }
  0x4e   : > { %1229 = shalt.err (!%p1226_p6)
}
  0x4f   : > { %s1421_s13 = smov 128   ;;  %s1422_s9 = smov 8  }
  0x50   : > { %1062 = dma.hbm_to_vmem [thread:$0]  (!%p1634_p7), %s221_s1, 1024, %s223_s4, %s212_s23, %s1421_s13, %s1421_s13, %s1422_s9  }
  0x51   : > { %s990_s18 = sshll.u32 %s1406_s26, 5  ;;  %s257_s7 = scalar_lea.vmem [#allocation8], %s968_s10 }
  0x52   : > { %s263_s0 = scalar_lea.hbm %s1933_s2, %s990_s18  ;;  %s265_s29 = sshll.u32 %s257_s7, 4  ;;  %s266_s29 = int_to_ptr.vmem [resolvable:$true] %s265_s29 }
  0x53   : > { %s1243_s12 = scalar_lea.vmem %s266_s29, 32  ;;  %p1974_p4 = pneg %p1536_p5 }
  0x54   : > { %p1244_p13 = scmp.ne.s32.totalorder %s266_s29, %s1243_s12  ;;  %s1423_s27 = smov [#allocation8]  }
  0x55   : > { %s1248_s11 = sshll.u32 %s1423_s27, 4  ;;  %s1249_s11 = int_to_ptr.vmem [resolvable:$false] %s1248_s11 }
  0x56   : > { %p1246_p2 = pnand %p1244_p13, %p1974_p4  ;;  %s1250_s21 = scalar_lea.vmem %s1249_s11, 64 }
  0x57   : > { %p1251_p10 = scmp.lt.s32.totalorder %s266_s29, %s1249_s11  ;;  %p1252_p7 = scmp.lt.s32.totalorder %s1250_s21, %s1243_s12 }
  0x58   : > { %p1247_p3 = pneg %p1246_p2 }
  0x59   : > { %p1253_p11 = por %p1252_p7, %p1251_p10 }
  0x5b   : > { %p1254_p12 = pnand %p1253_p11, %p1247_p3 }
  0x5d   : > { %1257 = shalt.err (!%p1254_p12)
}
  0x5e   : > { %1068 = dma.hbm_to_vmem [thread:$0]  (!%p1536_p5), %s263_s0, 32, %s266_s29, %s1541_s15  }
  0x5f   : > { %s991_s4 = sshll.u32 %s1406_s26, 12  ;;  %s1975_s1 = sshll.u32 %s1525_s6, 8 }
  0x60   : > { %s282_s27 = scalar_lea.hbm %s1934_s3, %s991_s4  ;;  %s276_s18 = scalar_lea.vmem [#allocation9], %s1975_s1 }
  0x61   : > { %s283_s8 = sshll.u32 %s276_s18, 4  ;;  %s273_s21 = scalar_lea.sflag [#allocation10], %s1525_s6  ;;  %s284_s8 = int_to_ptr.vmem [resolvable:$true] %s283_s8 }
  0x62   : > { %s1271_s20 = scalar_lea.vmem %s284_s8, 4096  ;;  %p1976_p6 = pmov %p1974_p4 }
  0x63   : > { %p1272_p9 = scmp.ne.s32.totalorder %s284_s8, %s1271_s20  ;;  %s1424_s7 = smov [#allocation9]  }
  0x64   : > { %s1276_s12 = sshll.u32 %s1424_s7, 4  ;;  %s1277_s12 = int_to_ptr.vmem [resolvable:$false] %s1276_s12 }
  0x65   : > { %p1274_p13 = pnand %p1272_p9, %p1976_p6  ;;  %s1278_s0 = scalar_lea.vmem %s1277_s12, 8192 }
  0x66   : > { %p1279_p2 = scmp.lt.s32.totalorder %s284_s8, %s1277_s12  ;;  %p1280_p3 = scmp.lt.s32.totalorder %s1278_s0, %s1271_s20 }
  0x67   : > { %p1275_p4 = pneg %p1274_p13 }
  0x68   : > { %p1281_p10 = por %p1280_p3, %p1279_p2 }
  0x6a   : > { %p1282_p7 = pnand %p1281_p10, %p1275_p4 }
  0x6c   : > { %1285 = shalt.err (!%p1282_p7)
}
  0x6d   : > { %1071 = dma.hbm_to_vmem [thread:$0]  (!%p1536_p5), %s282_s27, 4096, %s284_s8, %s273_s21, %s1421_s13, %s1421_s13, %s1422_s9  }
  0x6e   : > { %295 = sbr.rel (%p1554_p8) target bundleno = 645 (0x285), region = 40  ;;  %s1674_s6 = sand.u32 (!%p1554_p8), 1, %s1390_s22  }
  0x6f   : > { %s975_s15 = sshll.u32 (!%p1554_p8), %s1674_s6, 6  ;;  %s298_s29 = scalar_lea.sflag (!%p1554_p8), [#allocation4], %s1674_s6 }
  0x70   : > { %s1680_s11 = scalar_lea.vmem (!%p1554_p8), [#allocation3], %s975_s15 }
  0x73   : > { %1357 = dma.done.wait (%p1587_p1), %s298_s29, 1024  }
  0x74   : > { %1359 = vsyncadd (%p1587_p1), %s298_s29, 4294966272  ;;  %s306_s14 = sand.u32 1, %s1559_s17   ;;  %s308_s16 = sand.u32 1, %s1378_s19  }
  0x75   : > { %s976_s13 = sshll.u32 %s308_s16, 8  ;;  %s307_s9 = scalar_lea.sflag [#allocation7], %s306_s14 }
  0x76   : > { %s1688_s4 = scalar_lea.vmem [#allocation6], %s976_s13 }
  0x77   : > { %1361 = dma.done.wait (%p1603_p0), %s307_s9, 4128  }
  0x78   : > { %1363 = vsyncadd (%p1603_p0), %s307_s9, 4294963168  ;;  %s977_s23 = sshll.u32 %s308_s16, 1  ;;  %s325_s30 = scalar_lea.sflag [#allocation10], %s308_s16 }
  0x79   : > { %s1694_s10 = scalar_lea.vmem [#allocation8], %s977_s23  ;;  %s1696_s27 = scalar_lea.vmem [#allocation9], %s976_s13 }
  0x7a   : > { %1365 = dma.done.wait (%p1603_p0), %s325_s30, 4096  }
  0x7b   : > { %1367 = vsyncadd (%p1603_p0), %s325_s30, 4294963200  ;;  %v1425_v0 = vmov 0.0   ;;  %v414_v1 = vld [vmem:[%s1688_s4 + $0xf8] sm:$0xff]  ;;  %v413_v2 = vld [vmem:[%s1688_s4 + $0xf0] sm:$0xff]  ;;  %s1821_s5 = scalar_lea.vmem [#allocation11], %s975_s15  ;;  %p980_p5 = scmp.ne.s32.totalorder %s1398_s24, 0 }
  0x7c   : > { %491 = vmatprep.mubr.f32.mxu0 %v1425_v0  ;;  %v412_v3 = vld [vmem:[%s1688_s4 + $0xe8] sm:$0xff]  ;;  %427 = vmatprep.subr.mxu0 %v414_v1  ;;  %v411_v4 = vld [vmem:[%s1688_s4 + $0xe0] sm:$0xff]  ;;  %v410_v5 = vld [vmem:[%s1688_s4 + $0xd8] sm:$0xff] }
  0x7d   : > { %428 = vmatpush1.msra.mxu0 %v413_v2  ;;  %v409_v6 = vld [vmem:[%s1688_s4 + $0xd0] sm:$0xff]  ;;  %v408_v7 = vld [vmem:[%s1688_s4 + $0xc8] sm:$0xff]  ;;  %v407_v8 = vld [vmem:[%s1688_s4 + $0xc0] sm:$0xff] }
  0x7e   : > { %429 = vmatprep.subr.mxu0 %v412_v3  ;;  %v406_v9 = vld [vmem:[%s1688_s4 + $0xb8] sm:$0xff]  ;;  %v405_v10 = vld [vmem:[%s1688_s4 + $0xb0] sm:$0xff]  ;;  %v404_v11 = vld [vmem:[%s1688_s4 + $0xa8] sm:$0xff] }
  0x7f   : > { %430 = vmatpush1.msra.mxu0 %v411_v4  ;;  %v403_v12 = vld [vmem:[%s1688_s4 + $0xa0] sm:$0xff]  ;;  %v402_v13 = vld [vmem:[%s1688_s4 + $0x98] sm:$0xff]  ;;  %v401_v14 = vld [vmem:[%s1688_s4 + $0x90] sm:$0xff] }
  0x80   : > { %431 = vmatprep.subr.mxu0 %v410_v5  ;;  %v400_v15 = vld [vmem:[%s1688_s4 + $0x88] sm:$0xff]  ;;  %v399_v16 = vld [vmem:[%s1688_s4 + $0x80] sm:$0xff]  ;;  %v398_v19 = vld [vmem:[%s1688_s4 + $0x78] sm:$0xff] }
  0x81   : > { %432 = vmatpush1.msra.mxu0 %v409_v6  ;;  %v603_v17 = vld [vmem:[%s1696_s27 + $0xf8] sm:$0xff]  ;;  %v602_v20 = vld [vmem:[%s1696_s27 + $0xf0] sm:$0xff]  ;;  %v601_v23 = vld [vmem:[%s1696_s27 + $0xe8] sm:$0xff] }
  0x82   : > { %433 = vmatprep.subr.mxu0 %v408_v7  ;;  %v587_v18 = vld [vmem:[%s1696_s27 + $0x78] sm:$0xff]  ;;  %993 = vmatprep.subr.mxu1 %v603_v17  ;;  %v586_v21 = vld [vmem:[%s1696_s27 + $0x70] sm:$0xff]  ;;  %v396_v24 = vld [vmem:[%s1688_s4 + $0x68] sm:$0xff] }
  0x83   : > { %434 = vmatpush1.msra.mxu0 %v407_v8  ;;  %v397_v22 = vld [vmem:[%s1688_s4 + $0x70] sm:$0xff]  ;;  %994 = vmatpush3.msra.mxu1 %v587_v18  ;;  %v395_v26 = vld [vmem:[%s1688_s4 + $0x60] sm:$0xff]  ;;  %v394_v28 = vld [vmem:[%s1688_s4 + $0x58] sm:$0xff] }
  0x84   : > { %435 = vmatprep.subr.mxu0 %v406_v9  ;;  %995 = vmatprep.subr.mxu1 %v602_v20  ;;  %v585_v25 = vld [vmem:[%s1696_s27 + $0x68] sm:$0xff]  ;;  %v600_v27 = vld [vmem:[%s1696_s27 + $0xe0] sm:$0xff]  ;;  %v599_v31 = vld [vmem:[%s1696_s27 + $0xd8] sm:$0xff]  ;;  %v417_v9 = vlaneseq }
  0x85   : > { %436 = vmatpush1.msra.mxu0 %v405_v10  ;;  %996 = vmatpush3.msra.mxu1 %v586_v21  ;;  %v584_v29 = vld [vmem:[%s1696_s27 + $0x60] sm:$0xff]  ;;  %v393_v30 = vld [vmem:[%s1688_s4 + $0x50] sm:$0xff]  ;;  %v583_v33 = vld [vmem:[%s1696_s27 + $0x58] sm:$0xff] }
  0x86   : > { %437 = vmatprep.subr.mxu0 %v404_v11  ;;  %997 = vmatprep.subr.mxu1 %v601_v23  ;;  %v392_v32 = vld [vmem:[%s1688_s4 + $0x48] sm:$0xff]  ;;  %v391_v34 = vld [vmem:[%s1688_s4 + $0x40] sm:$0xff]  ;;  %v598_v35 = vld [vmem:[%s1696_s27 + $0xd0] sm:$0xff]  ;;  %v418_v10 = vshrl.u32 %v417_v9, 7 }
  0x87   : > { %438 = vmatpush1.msra.mxu0 %v403_v12  ;;  %998 = vmatpush3.msra.mxu1 %v585_v25  ;;  %v390_v36 = vld [vmem:[%s1688_s4 + $0x38] sm:$0xff]  ;;  %v389_v38 = vld [vmem:[%s1688_s4 + $0x30] sm:$0xff]  ;;  %v388_v40 = vld [vmem:[%s1688_s4 + $0x28] sm:$0xff] }
  0x88   : > { %439 = vmatprep.subr.mxu0 %v402_v13  ;;  %999 = vmatprep.subr.mxu1 %v600_v27  ;;  %v582_v37 = vld [vmem:[%s1696_s27 + $0x50] sm:$0xff]  ;;  %v597_v39 = vld [vmem:[%s1696_s27 + $0xc8] sm:$0xff]  ;;  %v387_v42 = vld [vmem:[%s1688_s4 + $0x20] sm:$0xff]  ;;  %v419_v11 = vsub.s32 0, %v418_v10  ;;  %v423_v13 = vsub.s32 1, %v418_v10 }
  0x89   : > { %440 = vmatpush1.msra.mxu0 %v401_v14  ;;  %1000 = vmatpush3.msra.mxu1 %v584_v29  ;;  %v581_v41 = vld [vmem:[%s1696_s27 + $0x48] sm:$0xff]  ;;  %v596_v43 = vld [vmem:[%s1696_s27 + $0xc0] sm:$0xff]  ;;  %v386_v44 = vld [vmem:[%s1688_s4 + $0x18] sm:$0xff] }
  0x8a   : > { %441 = vmatprep.subr.mxu0 %v400_v15  ;;  %1001 = vmatprep.subr.mxu1 %v599_v31  ;;  %v580_v45 = vld [vmem:[%s1696_s27 + $0x40] sm:$0xff]  ;;  %v385_v46 = vld [vmem:[%s1688_s4 + $0x10] sm:$0xff]  ;;  %v595_v47 = vld [vmem:[%s1696_s27 + $0xb8] sm:$0xff] }
  0x8b   : > { %442 = vmatpush1.msra.mxu0 %v399_v16  ;;  %1002 = vmatpush3.msra.mxu1 %v583_v33  ;;  %v384_v48 = vld [vmem:[%s1688_s4 + $0x8] sm:$0xff]  ;;  %v579_v49 = vld [vmem:[%s1696_s27 + $0x38] sm:$0xff]  ;;  %v594_v51 = vld [vmem:[%s1696_s27 + $0xb0] sm:$0xff] }
  0x8c   : > { %443 = vmatprep.subr.mxu0 %v398_v19  ;;  %1003 = vmatprep.subr.mxu1 %v598_v35  ;;  %v383_v50 = vld [vmem:[%s1688_s4] sm:$0xff]  ;;  %v578_v53 = vld [vmem:[%s1696_s27 + $0x30] sm:$0xff]  ;;  %v593_v54 = vld [vmem:[%s1696_s27 + $0xa8] sm:$0xff] }
  0x8d   : > { %444 = vmatpush1.msra.mxu0 %v397_v22  ;;  %1004 = vmatpush3.msra.mxu1 %v582_v37  ;;  %v375_v52 = vld [vmem:[%s1680_s11] sm:$0xff]  ;;  %v577_v55 = vld [vmem:[%s1696_s27 + $0x28] sm:$0xff]  ;;  %v378_v58 = vld [vmem:[%s1680_s11 + $0x18] sm:$0xff] }
  0x8e   : > { %445 = vmatprep.subr.mxu0 %v396_v24  ;;  %1005 = vmatprep.subr.mxu1 %v597_v39  ;;  %v376_v56 = vld [vmem:[%s1680_s11 + $0x8] sm:$0xff]  ;;  %v377_v57 = vld [vmem:[%s1680_s11 + $0x10] sm:$0xff]  ;;  %v379_v59 = vld [vmem:[%s1680_s11 + $0x20] sm:$0xff] }
  0x8f   : > { %446 = vmatpush1.msra.mxu0 %v395_v26  ;;  %1006 = vmatpush3.msra.mxu1 %v581_v41  ;;  %v380_v60 = vld [vmem:[%s1680_s11 + $0x28] sm:$0xff]  ;;  %v381_v61 = vld [vmem:[%s1680_s11 + $0x30] sm:$0xff]  ;;  %v382_v62 = vld [vmem:[%s1680_s11 + $0x38] sm:$0xff] }
  0x90   : > { %447 = vmatprep.subr.mxu0 %v394_v28  ;;  %1007 = vmatprep.subr.mxu1 %v596_v43  ;;  %v592_v63 = vld [vmem:[%s1696_s27 + $0xa0] sm:$0xff]  ;;  %v591_v2 = vld [vmem:[%s1696_s27 + $0x98] sm:$0xff]  ;;  %v590_v4 = vld [vmem:[%s1696_s27 + $0x90] sm:$0xff] }
  0x91   : > { %448 = vmatpush1.msra.mxu0 %v393_v30  ;;  %1008 = vmatpush3.msra.mxu1 %v580_v45  ;;  %v576_v1 = vld [vmem:[%s1696_s27 + $0x20] sm:$0xff]  ;;  %v575_v3 = vld [vmem:[%s1696_s27 + $0x18] sm:$0xff]  ;;  %v574_v5 = vld [vmem:[%s1696_s27 + $0x10] sm:$0xff] }
  0x92   : > { %449 = vmatprep.subr.mxu0 %v392_v32  ;;  %1009 = vmatprep.subr.mxu1 %v595_v47  ;;  %v589_v6 = vld [vmem:[%s1696_s27 + $0x88] sm:$0xff]  ;;  %v588_v7 = vld [vmem:[%s1696_s27 + $0x80] sm:$0xff]  ;;  %v415_v12 = vld [vmem:[%s1694_s10] sm:$0x3] }
  0x93   : > { %450 = vmatpush1.msra.mxu0 %v391_v34  ;;  %1010 = vmatpush3.msra.mxu1 %v579_v49  ;;  %v572_v8 = vld [vmem:[%s1696_s27] sm:$0xff]  ;;  %v1783_v14 = vrot.slane %v415_v12, %v419_v11  ;;  %v1785_v15 = vrot.slane %v415_v12, %v423_v13 }
  0x94   : > { %451 = vmatprep.subr.mxu0 %v390_v36  ;;  %1011 = vmatprep.subr.mxu1 %v594_v51 }
  0x95   : > { %452 = vmatpush1.msra.mxu0 %v389_v38  ;;  %1012 = vmatpush3.msra.mxu1 %v578_v53 }
  0x96   : > { %453 = vmatprep.subr.mxu0 %v388_v40  ;;  %1013 = vmatprep.subr.mxu1 %v593_v54 }
  0x97   : > { %454 = vmatpush1.msra.mxu0 %v387_v42  ;;  %1014 = vmatpush3.msra.mxu1 %v577_v55 }
  0x98   : > { %455 = vmatprep.subr.mxu0 %v386_v44  ;;  %1015 = vmatprep.subr.mxu1 %v592_v63 }
  0x99   : > { %456 = vmatpush1.msra.mxu0 %v385_v46  ;;  %1016 = vmatpush3.msra.mxu1 %v576_v1 }
  0x9a   : > { %457 = vmatprep.subr.mxu0 %v384_v48  ;;  %1017 = vmatprep.subr.mxu1 %v591_v2 }
  0x9b   : > { %458 = vmatpush1.msra.mxu0 %v383_v50  ;;  %1018 = vmatpush3.msra.mxu1 %v575_v3 }
  0x9c   : > { %492 = vmatmul.mubr.f32.vlgmr.msra.gmra.mxu0 %v375_v52  ;;  %1019 = vmatprep.subr.mxu1 %v590_v4 }
  0x9d   : > { %497 = vmatprep.mubr.f32.mxu0 %v1425_v0  ;;  %1020 = vmatpush3.msra.mxu1 %v574_v5 }
  0x9e   : > { %1021 = vmatprep.subr.mxu1 %v589_v6 }
  0xa0   : > { %498 = vmatmul.mubr.f32.gmra.mxu0 %v376_v56 }
  0xa1   : > { %503 = vmatprep.mubr.f32.mxu0 %v1425_v0 }
  0xa4   : > { %504 = vmatmul.mubr.f32.gmra.mxu0 %v377_v57 }
  0xa5   : > { %509 = vmatprep.mubr.f32.mxu0 %v1425_v0 }
  0xa8   : > { %510 = vmatmul.mubr.f32.gmra.mxu0 %v378_v58 }
  0xa9   : > { %515 = vmatprep.mubr.f32.mxu0 %v1425_v0 }
  0xac   : > { %516 = vmatmul.mubr.f32.gmra.mxu0 %v379_v59 }
  0xad   : > { %521 = vmatprep.mubr.f32.mxu0 %v1425_v0 }
  0xb0   : > { %522 = vmatmul.mubr.f32.gmra.mxu0 %v380_v60 }
  0xb1   : > { %527 = vmatprep.mubr.f32.mxu0 %v1425_v0 }
  0xb4   : > { %528 = vmatmul.mubr.f32.gmra.mxu0 %v381_v61 }
  0xb5   : > { %533 = vmatprep.mubr.f32.mxu0 %v1425_v0  ;;  %v573_v0 = vld [vmem:[%s1696_s27 + $0x8] sm:$0xff] }
  0xb6   : > { %1022 = vmatpush3.msra.mxu1 %v573_v0 }
  0xb7   : > { %1023 = vmatprep.subr.mxu1 %v588_v7 }
  0xb8   : > { %534 = vmatmul.mubr.f32.gmra.mxu0 %v382_v62  ;;  %1024 = vmatpush3.msra.mxu1 %v572_v8 }
 0x15c   : > { %v493_v16 = vpop.f32.mrf.mxu0 }
 0x15d   : > { %v494_v17 = vadd.f32 %v493_v16, %v1783_v14 }
 0x15e   : > { %v495_v18 = vpop.f32.mrf.mxu0 }
 0x15f   : > { %v496_v19 = vadd.f32 %v495_v18, %v1785_v15  ;;  %v540_v20 = vmax.f32 %v494_v17, 0.0 }
 0x160   : > { %v499_v21 = vpop.f32.mrf.mxu0 }
 0x161   : > { %v500_v22 = vadd.f32 %v499_v21, %v1783_v14  ;;  %v541_v23 = vmax.f32 %v496_v19, 0.0  ;;  %v556_v27 = vmul.f32 %v540_v20, %v540_v20 }
 0x162   : > { %v501_v24 = vpop.f32.mrf.mxu0 }
 0x163   : > { %v502_v25 = vadd.f32 %v501_v24, %v1785_v15  ;;  %v557_v26 = vmul.f32 %v541_v23, %v541_v23  ;;  %v542_v28 = vmax.f32 %v500_v22, 0.0 }
 0x164   : > { %v505_v29 = vpop.f32.mrf.mxu0 }
 0x165   : > { %v543_v30 = vmax.f32 %v502_v25, 0.0  ;;  %v506_v31 = vadd.f32 %v505_v29, %v1783_v14  ;;  %668 = vmatprep.mubr.f32.mxu1 %v557_v26  ;;  %v558_v35 = vmul.f32 %v542_v28, %v542_v28 }
 0x166   : > { %v507_v32 = vpop.f32.mrf.mxu0  ;;  %669 = vmatmul.mubr.f32.vlgmr.msra.gmra.mxu1 %v556_v27 }
 0x167   : > { %v559_v33 = vmul.f32 %v543_v30, %v543_v30  ;;  %v508_v34 = vadd.f32 %v507_v32, %v1785_v15  ;;  %v544_v36 = vmax.f32 %v506_v31, 0.0 }
 0x168   : > { %v511_v37 = vpop.f32.mrf.mxu0 }
 0x169   : > { %v545_v38 = vmax.f32 %v508_v34, 0.0  ;;  %v512_v39 = vadd.f32 %v511_v37, %v1783_v14  ;;  %673 = vmatprep.mubr.f32.mxu1 %v559_v33  ;;  %v560_v43 = vmul.f32 %v544_v36, %v544_v36 }
 0x16a   : > { %v513_v40 = vpop.f32.mrf.mxu0  ;;  %674 = vmatmul.mubr.f32.gmra.mxu1 %v558_v35 }
 0x16b   : > { %v561_v41 = vmul.f32 %v545_v38, %v545_v38  ;;  %v514_v42 = vadd.f32 %v513_v40, %v1785_v15  ;;  %v546_v44 = vmax.f32 %v512_v39, 0.0 }
 0x16c   : > { %v517_v45 = vpop.f32.mrf.mxu0 }
 0x16d   : > { %v547_v46 = vmax.f32 %v514_v42, 0.0  ;;  %v518_v47 = vadd.f32 %v517_v45, %v1783_v14  ;;  %678 = vmatprep.mubr.f32.mxu1 %v561_v41  ;;  %v562_v51 = vmul.f32 %v546_v44, %v546_v44 }
 0x16e   : > { %v519_v48 = vpop.f32.mrf.mxu0  ;;  %679 = vmatmul.mubr.f32.gmra.mxu1 %v560_v43 }
 0x16f   : > { %v563_v49 = vmul.f32 %v547_v46, %v547_v46  ;;  %v520_v50 = vadd.f32 %v519_v48, %v1785_v15  ;;  %v548_v52 = vmax.f32 %v518_v47, 0.0 }
 0x170   : > { %v523_v53 = vpop.f32.mrf.mxu0 }
 0x171   : > { %v549_v54 = vmax.f32 %v520_v50, 0.0  ;;  %v524_v55 = vadd.f32 %v523_v53, %v1783_v14  ;;  %683 = vmatprep.mubr.f32.mxu1 %v563_v49  ;;  %v564_v59 = vmul.f32 %v548_v52, %v548_v52 }
 0x172   : > { %v525_v56 = vpop.f32.mrf.mxu0  ;;  %684 = vmatmul.mubr.f32.gmra.mxu1 %v562_v51 }
 0x173   : > { %v565_v57 = vmul.f32 %v549_v54, %v549_v54  ;;  %v526_v58 = vadd.f32 %v525_v56, %v1785_v15  ;;  %v550_v60 = vmax.f32 %v524_v55, 0.0 }
 0x174   : > { %v529_v61 = vpop.f32.mrf.mxu0 }
 0x175   : > { %v551_v62 = vmax.f32 %v526_v58, 0.0  ;;  %v530_v63 = vadd.f32 %v529_v61, %v1783_v14  ;;  %688 = vmatprep.mubr.f32.mxu1 %v565_v57  ;;  %v566_v4 = vmul.f32 %v550_v60, %v550_v60 }
 0x176   : > { %v531_v1 = vpop.f32.mrf.mxu0  ;;  %689 = vmatmul.mubr.f32.gmra.mxu1 %v564_v59 }
 0x177   : > { %v567_v2 = vmul.f32 %v551_v62, %v551_v62  ;;  %v532_v3 = vadd.f32 %v531_v1, %v1785_v15  ;;  %v552_v5 = vmax.f32 %v530_v63, 0.0 }
 0x178   : > { %v535_v6 = vpop.f32.mrf.mxu0 }
 0x179   : > { %v553_v0 = vmax.f32 %v532_v3, 0.0  ;;  %v536_v7 = vadd.f32 %v535_v6, %v1783_v14  ;;  %693 = vmatprep.mubr.f32.mxu1 %v567_v2  ;;  %v568_v11 = vmul.f32 %v552_v5, %v552_v5 }
 0x17a   : > { %v537_v8 = vpop.f32.mrf.mxu0  ;;  %694 = vmatmul.mubr.f32.gmra.mxu1 %v566_v4 }
 0x17b   : > { %v569_v9 = vmul.f32 %v553_v0, %v553_v0  ;;  %v538_v10 = vadd.f32 %v537_v8, %v1785_v15  ;;  %v554_v12 = vmax.f32 %v536_v7, 0.0 }
 0x17d   : > { %v555_v13 = vmax.f32 %v538_v10, 0.0  ;;  %698 = vmatprep.mubr.f32.mxu1 %v569_v9  ;;  %v570_v17 = vmul.f32 %v554_v12, %v554_v12 }
 0x17e   : > { %699 = vmatmul.mubr.f32.gmra.mxu1 %v568_v11 }
 0x17f   : > { %v571_v16 = vmul.f32 %v555_v13, %v555_v13 }
 0x181   : > { %703 = vmatprep.mubr.f32.mxu1 %v571_v16 }
 0x182   : > { %704 = vmatmul.mubr.f32.gmra.mxu1 %v570_v17 }
 0x226   : > { %v1025_v18 = vpop.f32.mrf.mxu1 }
 0x228   : > { %v1026_v19 = vpop.f32.mrf.mxu1 }
 0x229   : > { %v1803_v20 = vadd.f32 %v1026_v19, %v1025_v18 }
 0x22a   : > { %v1028_v14 = vpop.f32.mrf.mxu1 }
 0x22c   : > { %v1029_v21 = vpop.f32.mrf.mxu1 }
 0x22d   : > { %v1805_v22 = vadd.f32 %v1029_v21, %v1028_v14 }
 0x22e   : > { %v1031_v23 = vpop.f32.mrf.mxu1 }
 0x230   : > { %v1032_v24 = vpop.f32.mrf.mxu1 }
 0x231   : > { %v1807_v15 = vadd.f32 %v1032_v24, %v1031_v23 }
 0x232   : > { %v1034_v25 = vpop.f32.mrf.mxu1 }
 0x234   : > { %v1035_v26 = vpop.f32.mrf.mxu1 }
 0x235   : > { %v1809_v27 = vadd.f32 %v1035_v26, %v1034_v25 }
 0x236   : > { %v1037_v28 = vpop.f32.mrf.mxu1 }
 0x238   : > { %v1038_v29 = vpop.f32.mrf.mxu1 }
 0x239   : > { %v1811_v30 = vadd.f32 %v1038_v29, %v1037_v28 }
 0x23a   : > { %v1040_v31 = vpop.f32.mrf.mxu1 }
 0x23c   : > { %v1041_v32 = vpop.f32.mrf.mxu1 }
 0x23d   : > { %v1813_v33 = vadd.f32 %v1041_v32, %v1040_v31 }
 0x23e   : > { %v1043_v34 = vpop.f32.mrf.mxu1 }
 0x240   : > { %v1044_v35 = vpop.f32.mrf.mxu1 }
 0x241   : > { %v1815_v36 = vadd.f32 %v1044_v35, %v1043_v34  ;;  %712 = sbr.rel (%p980_p5) target bundleno = 586 (0x24a), region = 60 }
 0x242   : > { %v1046_v37 = vpop.f32.mrf.mxu1 }
 0x244   : > { %v1047_v38 = vpop.f32.mrf.mxu1 }
 0x245   : > { %v1817_v39 = vadd.f32 %v1047_v38, %v1046_v37 }
 0x246   : > { %713 = vst [vmem:[#allocation2 + $0x30] sm:$0xff] %v1803_v20  ;;  %714 = vst [vmem:[#allocation2] sm:$0xff] %v1805_v22 }
 0x247   : > { %715 = vst [vmem:[#allocation2 + $0x18] sm:$0xff] %v1807_v15  ;;  %716 = vst [vmem:[#allocation2 + $0x10] sm:$0xff] %v1809_v27 }
 0x248   : > { %717 = vst [vmem:[#allocation2 + $0x8] sm:$0xff] %v1811_v30  ;;  %718 = vst [vmem:[#allocation2 + $0x20] sm:$0xff] %v1813_v33 }
 0x249   : > { %719 = vst [vmem:[#allocation2 + $0x28] sm:$0xff] %v1815_v36  ;;  %720 = vst [vmem:[#allocation2 + $0x38] sm:$0xff] %v1817_v39 }
 0x24a PF: > { %p721_p8 = scmp.gt.s32.totalorder %s1398_s24, 0  ;;  %p722_p1 = scmp.lt.s32.totalorder %s1398_s24, 1 }
 0x24c   : > { %p723_p0 = pnand %p722_p1, %p721_p8 }
 0x24e   : > { %726 = sbr.rel (%p723_p0) target bundleno = 602 (0x25a), region = 64 }
 0x253   : > { %v727_v40 = vld [vmem:[#allocation2 + $0x30] sm:$0xff]  ;;  %v728_v41 = vld [vmem:[#allocation2] sm:$0xff]  ;;  %v729_v42 = vld [vmem:[#allocation2 + $0x18] sm:$0xff] }
 0x254   : > { %v735_v43 = vadd.f32 %v1803_v20, %v727_v40  ;;  %v736_v44 = vadd.f32 %v1805_v22, %v728_v41  ;;  %v737_v45 = vadd.f32 %v1807_v15, %v729_v42  ;;  %v730_v46 = vld [vmem:[#allocation2 + $0x10] sm:$0xff]  ;;  %v731_v47 = vld [vmem:[#allocation2 + $0x8] sm:$0xff]  ;;  %v732_v48 = vld [vmem:[#allocation2 + $0x20] sm:$0xff] }
 0x255   : > { %v738_v49 = vadd.f32 %v1809_v27, %v730_v46  ;;  %v739_v50 = vadd.f32 %v1811_v30, %v731_v47  ;;  %v740_v51 = vadd.f32 %v1813_v33, %v732_v48  ;;  %v733_v52 = vld [vmem:[#allocation2 + $0x28] sm:$0xff]  ;;  %v734_v53 = vld [vmem:[#allocation2 + $0x38] sm:$0xff] }
 0x256   : > { %743 = vst [vmem:[#allocation2 + $0x30] sm:$0xff] %v735_v43  ;;  %744 = vst [vmem:[#allocation2] sm:$0xff] %v736_v44  ;;  %v741_v54 = vadd.f32 %v1815_v36, %v733_v52  ;;  %v742_v55 = vadd.f32 %v1817_v39, %v734_v53 }
 0x257   : > { %745 = vst [vmem:[#allocation2 + $0x18] sm:$0xff] %v737_v45  ;;  %746 = vst [vmem:[#allocation2 + $0x10] sm:$0xff] %v738_v49 }
 0x258   : > { %747 = vst [vmem:[#allocation2 + $0x8] sm:$0xff] %v739_v50  ;;  %748 = vst [vmem:[#allocation2 + $0x20] sm:$0xff] %v740_v51 }
 0x259   : > { %749 = vst [vmem:[#allocation2 + $0x28] sm:$0xff] %v741_v54  ;;  %750 = vst [vmem:[#allocation2 + $0x38] sm:$0xff] %v742_v55 }
 0x25a PF: > { %p981_p11 = scmp.ne.s32.totalorder %s1398_s24, 1 }
 0x25b   : > { %s1977_s18 = sld [smem:[#allocation28_spill]] (!%p981_p11) }
 0x25c   : > { %754 = sbr.rel (%p981_p11) target bundleno = 618 (0x26a), region = 68 }
 0x261   : > { %v755_v56 = vld [vmem:[#allocation2 + $0x30] sm:$0xff]  ;;  %v982_v57 = vld [vmem:[%s1977_s18] ss:$0 sm:$0xff]  ;;  %v757_v61 = vld [vmem:[#allocation2 + $0x18] sm:$0xff] }
 0x262   : > { %v756_v58 = vld [vmem:[#allocation2] sm:$0xff]  ;;  %v763_v59 = vadd.f32 %v1803_v20, %v755_v56  ;;  %v758_v62 = vld [vmem:[#allocation2 + $0x10] sm:$0xff]  ;;  %v759_v63 = vld [vmem:[#allocation2 + $0x8] sm:$0xff]  ;;  %v765_v1 = vadd.f32 %v1807_v15, %v757_v61 }
 0x263   : > { %v764_v60 = vadd.f32 %v1805_v22, %v756_v58  ;;  %v766_v2 = vadd.f32 %v1809_v27, %v758_v62  ;;  %v767_v3 = vadd.f32 %v1811_v30, %v759_v63  ;;  %v760_v4 = vld [vmem:[#allocation2 + $0x20] sm:$0xff]  ;;  %v761_v5 = vld [vmem:[#allocation2 + $0x28] sm:$0xff]  ;;  %v762_v6 = vld [vmem:[#allocation2 + $0x38] sm:$0xff] }
 0x264   : > { %v778_v0 = vadd.f32 %v982_v57, %v763_v59  ;;  %v768_v8 = vadd.f32 %v1813_v33, %v760_v4  ;;  %v769_v9 = vadd.f32 %v1815_v36, %v761_v5  ;;  %v780_v10 = vadd.f32 %v982_v57, %v765_v1 }
 0x265   : > { %v779_v7 = vadd.f32 %v982_v57, %v764_v60  ;;  %v781_v11 = vadd.f32 %v982_v57, %v766_v2  ;;  %v782_v12 = vadd.f32 %v982_v57, %v767_v3  ;;  %v770_v13 = vadd.f32 %v1817_v39, %v762_v6 }
 0x266   : > { %786 = vst [vmem:[%s1821_s5] sm:$0xff] %v778_v0  ;;  %v783_v16 = vadd.f32 %v982_v57, %v768_v8  ;;  %v784_v17 = vadd.f32 %v982_v57, %v769_v9  ;;  %788 = vst [vmem:[%s1821_s5 + $0x10] sm:$0xff] %v780_v10 }
 0x267   : > { %787 = vst [vmem:[%s1821_s5 + $0x8] sm:$0xff] %v779_v7  ;;  %789 = vst [vmem:[%s1821_s5 + $0x18] sm:$0xff] %v781_v11  ;;  %v785_v18 = vadd.f32 %v982_v57, %v770_v13 }
 0x268   : > { %790 = vst [vmem:[%s1821_s5 + $0x20] sm:$0xff] %v782_v12  ;;  %791 = vst [vmem:[%s1821_s5 + $0x28] sm:$0xff] %v783_v16 }
 0x269   : > { %792 = vst [vmem:[%s1821_s5 + $0x30] sm:$0xff] %v784_v17  ;;  %793 = vst [vmem:[%s1821_s5 + $0x38] sm:$0xff] %v785_v18 }
 0x26a PF: > { %s1978_s24 = sld [smem:[#allocation19_spill]]  ;;  %s808_s0 = sshll.u32 %s1821_s5, 4  ;;  %s1869_s0 = int_to_ptr.vmem [resolvable:$true] %s808_s0 }
 0x26b   : > { %s1979_s7 = sld [smem:[#allocation29_spill]]  ;;  %s795_s15 = scalar_lea.sflag [#allocation5], %s1674_s6 }
 0x26c   : > { %s1286_s29 = scalar_lea.vmem %s1869_s0, 1024  ;;  %p1980_p9 = scmp.ne.s32.totalorder %s1968_s25, 0 }
 0x26d   : > { %p1287_p12 = scmp.ne.s32.totalorder %s1869_s0, %s1286_s29  ;;  %s1426_s11 = smov [#allocation11]  }
 0x26e   : > { %s1290_s14 = sshll.u32 %s1426_s11, 4  ;;  %s1291_s14 = int_to_ptr.vmem [resolvable:$false] %s1290_s14 }
 0x26f   : > { %p1288_p6 = pnand %p1287_p12, %p1980_p9  ;;  %s1292_s16 = scalar_lea.vmem %s1291_s14, 2048 }
 0x270   : > { %s992_s8 = sshll.u32 %s1978_s24, 10  ;;  %p1293_p4 = scmp.lt.s32.totalorder %s1869_s0, %s1291_s14 }
 0x271   : > { %s1866_s12 = scalar_lea.hbm %s1979_s7, %s992_s8  ;;  %p1289_p13 = pneg %p1288_p6 }
 0x272   : > { %p1294_p2 = scmp.lt.s32.totalorder %s1292_s16, %s1286_s29 }
 0x274   : > { %p1295_p3 = por %p1294_p2, %p1293_p4 }
 0x276   : > { %p1296_p10 = pnand %p1295_p3, %p1289_p13 }
 0x278   : > { %1299 = shalt.err (!%p1296_p10)
}
 0x279   : > { %s1300_s13 = scalar_lea.hbm %s1866_s12, 1024  ;;  %s1304_s23 = scalar_lea.hbm %s1979_s7, 2048 }
 0x27a   : > { %p1301_p7 = scmp.ne.s32.totalorder %s1866_s12, %s1300_s13  ;;  %p1305_p1 = scmp.lt.s32.totalorder %s1866_s12, %s1979_s7 }
 0x27b   : > { %p1306_p0 = scmp.lt.s32.totalorder %s1304_s23, %s1300_s13 }
 0x27c   : > { %p1302_p5 = pnand %p1301_p7, %p1980_p9 }
 0x27d   : > { %p1307_p11 = por %p1306_p0, %p1305_p1 }
 0x27e   : > { %p1303_p8 = pneg %p1302_p5 }
 0x280   : > { %p1308_p12 = pnand %p1307_p11, %p1303_p8 }
 0x282   : > { %1311 = shalt.err (!%p1308_p12)
}
 0x283   : > { %s1427_s27 = smov 128   ;;  %s1428_s5 = smov 8  }
 0x284   : > { %1057 = dma.vmem_to_hbm [thread:$0]  (%p1980_p9), %s1869_s0, 1024, %s1866_s12, %s795_s15, %s1427_s27, %s1427_s27, %s1428_s5  }
 0x285 PF: > { %s1981_s17 = sld [smem:[#allocation17_spill]]  ;;  %p1077_p6 = scmp.ge.s32.totalorder %s1414_s28, 2 }
 0x286   : > { %s1982_s1 = sld [smem:[#allocation25_spill]] }
 0x28b   : > { %s823_s18 = sand.u32 1, %s1981_s17  }
 0x28c   : > { %p1983_p13 = scmp.ne.s32.totalorder %s1982_s1, 0  ;;  %s824_s24 = scalar_lea.sflag [#allocation5], %s823_s18 }
 0x28e   : > { %p1073_p4 = pnand %p1077_p6, %p1983_p13 }
 0x290   : > { %p1074_p2 = pneg %p1073_p4 }
 0x292   : > { %1369 = dma.done.wait (%p1074_p2), %s824_s24, 1024  }
 0x293   : > { %1371 = vsyncadd (%p1074_p2), %s824_s24, 4294966272  ;;  %s27_s28 = sadd.s32 1, %s1414_s28   ;;  %s1984_s8 = sld [smem:[#allocation16_spill]] }
 0x294   : > { %p24_p3 = scmp.ge.s32.totalorder %s27_s28, 6   ;;  %s1985_s20 = sld [smem:[#allocation23_spill]] }
 0x295   : > { %s1986_s25 = sld [smem:[#allocation18_spill]]  ;;  %s1991_s18 = smov %s1378_s19 }
 0x296   : > { %s1987_s23 = sld [smem:[#allocation24_spill]]  ;;  %s1993_s21 = smov %s1390_s22 }
 0x297   : > { %s1988_s6 = sld [smem:[#allocation20_spill]]  ;;  %s1995_s24 = smov %s1406_s26 }
 0x298   : > { %s1989_s12 = sld [smem:[#allocation21_spill]] }
 0x299   : > { %s1990_s27 = sld [smem:[#allocation22_spill]]  ;;  %s1992_s19 = smov %s1984_s8 }
 0x29a   :  { %26 = sbr.rel (!%p24_p3) target bundleno = 18 (0x12), region = 134 }
 0x29b   : > { %s1994_s22 = smov %s1986_s25 }
 0x29d   : > { %s1996_s25 = smov %s1988_s6 }
 0x29e   : > { %s1997_s26 = smov %s1989_s12 }
 0x29f   :  { %829 = vsyncpa [#allocation4], 1 }
 0x2a0   :  { %831 = vsyncpa [#allocation4 + $0x1], 1 }
 0x2a1   :  { %832 = vsyncpa [#allocation7], 1 }
 0x2a2   :  { %834 = vsyncpa [#allocation7 + $0x1], 1 }
 0x2a3   :  { %835 = vsyncpa [#allocation10], 1 }
 0x2a4   :  { %837 = vsyncpa [#allocation10 + $0x1], 1 }
 0x2a5   :  { %838 = vsyncpa [#allocation5], 1 }
 0x2a6   :  { %840 = vsyncpa [#allocation5 + $0x1], 1 }

</bundles_post_ra>
